<compile_context>
chip_gen: v7x
topology: tpu7x:2x2x1
jax: 0.10.0
libtpu: 0.0.40
codegen_flags: <defaults>
</compile_context>

<pallas_src>
import jax
import jax.numpy as jnp
from jax.experimental import pallas as pl
from jax.experimental.pallas import tpu as pltpu

BN_EPS = 1e-5
OUT_PAD = 128          # lane-dense padded output width
_TILE_BUDGET = 4 << 20  # ~4 MiB of f32 x-tile per buffer


def _choose_tile_n(n, c, hw, itemsize):
    """Rows of x per grid step; multiple of 8 when tiling, else the full N."""
    rows = _TILE_BUDGET // max(1, c * hw * itemsize)
    rows = max(8, min(512, rows))
    rows = (rows // 8) * 8
    if n <= rows:
        return n
    return rows


def bbox_predictor_forward(x, w_t, b, gamma, beta):
    """x: (N, C, H, W). Returns bbox_deltas: (N, 4*num_classes) float32.

    `b` (the Linear bias) is accepted for API fidelity but is mathematically
    cancelled by the following training-mode BatchNorm, so it is not used.
    """
    del b  # exactly cancelled by BN's batch-mean subtraction
    n, c, h, w = x.shape
    hw = h * w
    out_dim = w_t.shape[1]

    # Lane-dense input layout: (N, C, H*W).
    x3 = x.reshape(n, c, hw)

    tn = _choose_tile_n(n, c, hw, x3.dtype.itemsize)
    n_pad = pl.cdiv(n, tn) * tn
    if n_pad != n:
        x3 = jnp.pad(x3, ((0, n_pad - n), (0, 0), (0, 0)))
    num_tiles = n_pad // tn

    # Pad the 8-wide feature dim to 128 lanes; merge gamma/beta into one array.
    w_pad = jnp.zeros((c, OUT_PAD), jnp.float32).at[:, :out_dim].set(
        w_t.astype(jnp.float32))
    params = jnp.zeros((2, OUT_PAD), jnp.float32)
    params = params.at[0, :out_dim].set(gamma.astype(jnp.float32))
    params = params.at[1, :out_dim].set(beta.astype(jnp.float32))

    def kernel(x_ref, w_ref, p_ref, o_ref):
        i = pl.program_id(0)

        # --- per-tile: global average pool + Linear (bias-free) ---
        xt = x_ref[...].astype(jnp.float32)                  # (TN, C, HW)
        pooled = jnp.mean(xt, axis=-1)                       # (TN, C) lane reduce
        y = jnp.dot(pooled, w_ref[...],
                    preferred_element_type=jnp.float32)      # (TN, OUT_PAD)
        start = pl.multiple_of(i * tn, tn)
        o_ref[pl.ds(start, tn), :] = y                       # resident output

        # --- last step: BatchNorm1d over the batch axis ---
        @pl.when(i == pl.num_programs(0) - 1)
        def _():
            yf = o_ref[...]                                  # (N_pad, OUT_PAD)
            if n_pad == n:
                mean = jnp.mean(yf, axis=0, keepdims=True)
                var = jnp.mean((yf - mean) ** 2, axis=0, keepdims=True)
            else:
                row = jax.lax.broadcasted_iota(jnp.int32, (n_pad, 1), 0)
                valid = row < n
                mean = jnp.sum(jnp.where(valid, yf, 0.0), axis=0,
                               keepdims=True) / n
                var = jnp.sum(jnp.where(valid, (yf - mean) ** 2, 0.0),
                              axis=0, keepdims=True) / n
            g = p_ref[0:1, :]
            be = p_ref[1:2, :]
            o_ref[...] = ((yf - mean) * jax.lax.rsqrt(var + BN_EPS) * g
                          + be).astype(o_ref.dtype)

    out_pad = pl.pallas_call(
        kernel,
        out_shape=jax.ShapeDtypeStruct((n_pad, OUT_PAD), jnp.float32),
        grid=(num_tiles,),
        in_specs=[
            pl.BlockSpec((tn, c, hw), lambda i: (i, 0, 0)),
            pl.BlockSpec((c, OUT_PAD), lambda i: (0, 0)),
            pl.BlockSpec((2, OUT_PAD), lambda i: (0, 0)),
        ],
        # Output block index is constant across the grid -> VMEM-resident
        # accumulator; written back to HBM once after the last step.
        out_specs=pl.BlockSpec((n_pad, OUT_PAD), lambda i: (0, 0)),
        compiler_params=pltpu.CompilerParams(
            dimension_semantics=("arbitrary",)),
    )(x3, w_pad, params)

    return out_pad[:n, :out_dim]


def _reference(x, w_t, b, gamma, beta):
    pooled = jnp.mean(x, axis=(2, 3))
    y = pooled @ w_t + b
    mean = jnp.mean(y, axis=0, keepdims=True)
    var = jnp.mean((y - mean) ** 2, axis=0, keepdims=True)
    return (y - mean) * jax.lax.rsqrt(var + BN_EPS) * gamma + beta


if __name__ == "__main__":
    # Small shapes consistent with the module's forward: NCHW feature map.
    N, C, H, W = 2, 4, 16, 16
    num_classes = 2
    out_dim = 4 * num_classes  # 8

    key = jax.random.PRNGKey(0)
    kx, kw, kg = jax.random.split(key, 3)

    x = jax.random.normal(kx, (N, C, H, W), dtype=jnp.float32)

    # Deterministic parameter init mirroring the module's __init__:
    #   Linear weight ~ N(0, 0.01), bias = 0
    #   BatchNorm1d weight (gamma) ~ N(0, 0.01), bias (beta) = 0
    w = 0.01 * jax.random.normal(kw, (out_dim, C), dtype=jnp.float32)  # (8, C)
    w_t = w.T                                                          # (C, 8)
    b = jnp.zeros((out_dim,), dtype=jnp.float32)
    gamma = 0.01 * jax.random.normal(kg, (out_dim,), dtype=jnp.float32)
    beta = jnp.zeros((out_dim,), dtype=jnp.float32)

    out = bbox_predictor_forward(x, w_t, b, gamma, beta)
    out = jax.block_until_ready(out)

    ref = _reference(x, w_t, b, gamma, beta)
    assert out.shape == (N, out_dim)
    assert jnp.allclose(out, ref, atol=1e-5, rtol=1e-5), "mismatch vs reference"

    print("KERNEL_OK")
</pallas_src>

<mosaic_0001>
module attributes {stable_mosaic.version = 11 : i64} {
  func.func @kernel(%arg0: i32, %arg1: memref<2x4x256xf32, #tpu.memory_space<vmem>>, %arg2: memref<4x128xf32, #tpu.memory_space<vmem>>, %arg3: memref<2x128xf32, #tpu.memory_space<vmem>>, %arg4: memref<2x128xf32, #tpu.memory_space<vmem>>) attributes {dimension_semantics = [#tpu.dimension_semantics<arbitrary>], iteration_bounds = array<i64: 1>, scalar_prefetch = 0 : i64, scratch_operands = 0 : i64, tpu.core_type = #tpu.core_type<tc>, window_params = [{transform_indices = @transform_0, window_bounds = array<i64: 2, 4, 256>}, {pipeline_mode = #tpu.pipeline_mode<synchronous>, transform_indices = @transform_1, window_bounds = array<i64: 4, 128>}, {pipeline_mode = #tpu.pipeline_mode<synchronous>, transform_indices = @transform_2, window_bounds = array<i64: 2, 128>}, {pipeline_mode = #tpu.pipeline_mode<synchronous>, transform_indices = @transform_3, window_bounds = array<i64: 2, 128>}]} {
    %c0 = arith.constant 0 : index
    %c0_0 = arith.constant 0 : index
    %c0_1 = arith.constant 0 : index
    %0 = vector.load %arg1[%c0, %c0_0, %c0_1] : memref<2x4x256xf32, #tpu.memory_space<vmem>>, vector<2x4x256xf32>
    %cst = arith.constant dense<0.000000e+00> : vector<2x4xf32>
    %1 = vector.multi_reduction <add>, %0, %cst [2] : vector<2x4x256xf32> to vector<2x4xf32>
    %cst_2 = arith.constant 2.560000e+02 : f32
    %2 = vector.broadcast %cst_2 : f32 to vector<2x4xf32>
    %3 = arith.divf %1, %2 : vector<2x4xf32>
    %c0_3 = arith.constant 0 : index
    %c0_4 = arith.constant 0 : index
    %4 = vector.load %arg2[%c0_3, %c0_4] : memref<4x128xf32, #tpu.memory_space<vmem>>, vector<4x128xf32>
    %cst_5 = arith.constant dense<0.000000e+00> : vector<2x128xf32>
    %5 = tpu.matmul %3, %4, %cst_5 {dimension_numbers = #tpu.dot_dimension_numbers<[1], [0], [0], [1], [0, 0, 1, 1], [], []>} : vector<2x4xf32>, vector<4x128xf32>, vector<2x128xf32> -> vector<2x128xf32>
    %c2_i32 = arith.constant 2 : i32
    %6 = arith.muli %arg0, %c2_i32 : i32
    %7 = tpu.assume_multiple %6, 2 : i32
    %8 = arith.index_cast %7 : i32 to index
    %c0_6 = arith.constant 0 : index
    %9 = vector.load %arg4[%8, %c0_6] : memref<2x128xf32, #tpu.memory_space<vmem>>, vector<2x128xf32>
    tpu.vector_store %arg4[%8, %c0_6], %5 {strides = array<i32>} : memref<2x128xf32, #tpu.memory_space<vmem>>, vector<2x128xf32>,
    %c0_i32 = arith.constant 0 : i32
    %10 = arith.cmpi eq, %arg0, %c0_i32 : i32
    %11 = arith.extui %10 : i1 to i32
    %c0_i32_7 = arith.constant 0 : i32
    %12 = arith.cmpi ne, %11, %c0_i32_7 : i32
    scf.if %12 {
      %c0_8 = arith.constant 0 : index
      %c0_9 = arith.constant 0 : index
      %13 = vector.load %arg4[%c0_8, %c0_9] : memref<2x128xf32, #tpu.memory_space<vmem>>, vector<2x128xf32>
      %cst_10 = arith.constant dense<0.000000e+00> : vector<128xf32>
      %14 = vector.multi_reduction <add>, %13, %cst_10 [0] : vector<2x128xf32> to vector<128xf32>
      %15 = vector.shape_cast %14 : vector<128xf32> to vector<1x128xf32>
      %cst_11 = arith.constant 2.000000e+00 : f32
      %16 = vector.broadcast %cst_11 : f32 to vector<1x128xf32>
      %17 = arith.divf %15, %16 : vector<1x128xf32>
      %18 = vector.broadcast %17 : vector<1x128xf32> to vector<2x128xf32>
      %19 = arith.subf %13, %18 : vector<2x128xf32>
      %20 = arith.mulf %19, %19 : vector<2x128xf32>
      %cst_12 = arith.constant dense<0.000000e+00> : vector<128xf32>
      %21 = vector.multi_reduction <add>, %20, %cst_12 [0] : vector<2x128xf32> to vector<128xf32>
      %22 = vector.shape_cast %21 : vector<128xf32> to vector<1x128xf32>
      %cst_13 = arith.constant 2.000000e+00 : f32
      %23 = vector.broadcast %cst_13 : f32 to vector<1x128xf32>
      %24 = arith.divf %22, %23 : vector<1x128xf32>
      %c0_14 = arith.constant 0 : index
      %c0_15 = arith.constant 0 : index
      %25 = vector.load %arg3[%c0_14, %c0_15] : memref<2x128xf32, #tpu.memory_space<vmem>>, vector<1x128xf32>
      %c1 = arith.constant 1 : index
      %c0_16 = arith.constant 0 : index
      %26 = vector.load %arg3[%c1, %c0_16] : memref<2x128xf32, #tpu.memory_space<vmem>>, vector<1x128xf32>
      %27 = vector.broadcast %17 : vector<1x128xf32> to vector<2x128xf32>
      %28 = arith.subf %13, %27 : vector<2x128xf32>
      %cst_17 = arith.constant 9.99999974E-6 : f32
      %29 = vector.broadcast %cst_17 : f32 to vector<1x128xf32>
      %30 = arith.addf %24, %29 : vector<1x128xf32>
      %31 = math.rsqrt %30 : vector<1x128xf32>
      %32 = vector.broadcast %31 : vector<1x128xf32> to vector<2x128xf32>
      %33 = arith.mulf %28, %32 : vector<2x128xf32>
      %34 = vector.broadcast %25 : vector<1x128xf32> to vector<2x128xf32>
      %35 = arith.mulf %33, %34 : vector<2x128xf32>
      %36 = vector.broadcast %26 : vector<1x128xf32> to vector<2x128xf32>
      %37 = arith.addf %35, %36 : vector<2x128xf32>
      %c0_18 = arith.constant 0 : index
      %c0_19 = arith.constant 0 : index
      %38 = vector.load %arg4[%c0_18, %c0_19] : memref<2x128xf32, #tpu.memory_space<vmem>>, vector<2x128xf32>
      tpu.vector_store %arg4[%c0_18, %c0_19], %37 {strides = array<i32>} : memref<2x128xf32, #tpu.memory_space<vmem>>, vector<2x128xf32>,
    } else {
    }
    return
  }
  func.func @transform_0(%arg0: i32) -> (i32, i32, i32) {
    %c0_i32 = arith.constant 0 : i32
    %c0_i32_0 = arith.constant 0 : i32
    %c0_i32_1 = arith.constant 0 : i32
    return %arg0, %c0_i32, %c0_i32_0 : i32, i32, i32
  }
  func.func @transform_1(%arg0: i32) -> (i32, i32) {
    %c0_i32 = arith.constant 0 : i32
    %c0_i32_0 = arith.constant 0 : i32
    %c0_i32_1 = arith.constant 0 : i32
    return %c0_i32, %c0_i32_0 : i32, i32
  }
  func.func @transform_2(%arg0: i32) -> (i32, i32) {
    %c0_i32 = arith.constant 0 : i32
    %c0_i32_0 = arith.constant 0 : i32
    %c0_i32_1 = arith.constant 0 : i32
    return %c0_i32, %c0_i32_0 : i32, i32
  }
  func.func @transform_3(%arg0: i32) -> (i32, i32) {
    %c0_i32 = arith.constant 0 : i32
    %c0_i32_0 = arith.constant 0 : i32
    %c0_i32_1 = arith.constant 0 : i32
    return %c0_i32, %c0_i32_0 : i32, i32
  }
}

</mosaic_0001>

<bundles_post_ra>
// kernel: tpu_custom_call.1
= control target key start
LH: loop header
LB: loop body
LE: loop exit
PB: predicated region body
PF: predicated region fallthrough
CT: control target
= control target key end

     0   :  { %8 = vsyncpa [#allocation3], 0  ;;  %s382_s0 = inlined_call_operand.hbm [shape: f32[2,4,256], index: 0, kind: input, shape index: {}]   ;;  %s383_s1 = inlined_call_operand.hbm [shape: f32[4,128], index: 1, kind: input, shape index: {}]   ;;  %s384_s2 = inlined_call_operand.vmem [shape: f32[2,128], index: 2, kind: input, shape index: {}]   ;;  %s385_s3 = inlined_call_operand.hbm [shape: f32[2,128], index: 3, kind: output, shape index: {}]  }
   0x1   :  { %9 = vsyncpa [#allocation6], 0 }
   0x2   :  { %10 = vsyncpa [#allocation4], 0  ;;  %s308_s12 = smov [#allocation2]   ;;  %s236_s16 = scalar_lea.hbm %s382_s0, 256 }
   0x3   :  { %s16_s13 = sshll.u32 %s308_s12, 4  ;;  %p237_p0 = scmp.ne.s32.totalorder %s382_s0, %s236_s16  ;;  %s17_s13 = int_to_ptr.vmem [resolvable:$true] %s16_s13 }
   0x4   :  { %p240_p1 = scmp.lt.u32.totalorder %s236_s16, %s382_s0 }
   0x6   :  { %p242_p2 = pnand %p240_p1, %p237_p0 }
   0x8   :  { %245 = shalt.err (!%p242_p2)
}
   0x9   :  { %s246_s21 = scalar_lea.vmem %s17_s13, 256  ;;  %p251_p4 = scmp.lt.s32.totalorder %s17_s13, %s17_s13 }
   0xa   :  { %p247_p3 = scmp.ne.s32.totalorder %s17_s13, %s246_s21  ;;  %p252_p5 = scmp.lt.s32.totalorder %s246_s21, %s246_s21 }
   0xc   :  { %p253_p6 = por %p252_p5, %p251_p4 }
   0xe   :  { %p254_p7 = pnand %p253_p6, %p247_p3 }
  0x10   :  { %257 = shalt.err (!%p254_p7)
}
  0x11   :  { %s309_s22 = smov 128   ;;  %s310_s23 = smov 8  }
  0x12   :  { %22 = dma.hbm_to_vmem [thread:$0]  %s382_s0, 256, %s17_s13, [#allocation3], %s309_s22, %s309_s22, %s310_s23  }
  0x13   :  { %s311_s26 = smov [#allocation5]   ;;  %s258_s30 = scalar_lea.hbm %s383_s1, 64 }
  0x14   :  { %s29_s27 = sshll.u32 %s311_s26, 4  ;;  %p259_p8 = scmp.ne.s32.totalorder %s383_s1, %s258_s30  ;;  %s30_s27 = int_to_ptr.vmem [resolvable:$true] %s29_s27 }
  0x15   :  { %p262_p9 = scmp.lt.u32.totalorder %s258_s30, %s383_s1 }
  0x17   :  { %p264_p10 = pnand %p262_p9, %p259_p8 }
  0x19   :  { %267 = shalt.err (!%p264_p10)
}
  0x1a   :  { %s268_s8 = scalar_lea.vmem %s30_s27, 64  ;;  %p273_p12 = scmp.lt.s32.totalorder %s30_s27, %s30_s27 }
  0x1b   :  { %p269_p11 = scmp.ne.s32.totalorder %s30_s27, %s268_s8  ;;  %p274_p13 = scmp.lt.s32.totalorder %s268_s8, %s268_s8 }
  0x1d   :  { %p275_p0 = por %p274_p13, %p273_p12 }
  0x1f   :  { %p276_p1 = pnand %p275_p0, %p269_p11 }
  0x21   :  { %279 = shalt.err (!%p276_p1)
}
  0x22   :  { %32 = dma.hbm_to_vmem [thread:$0]  %s383_s1, 64, %s30_s27, [#allocation6]  }
  0x23   :  { %302 = dma.done.wait [#allocation3], 256  }
  0x24   :  { %303 = vsyncadd [#allocation3], 4294967040 }
  0x25   :  { %304 = dma.done.wait [#allocation6], 64  }
  0x26   :  { %305 = vsyncadd [#allocation6], 4294967232  ;;  %vm49_vm0 = vcmask 1043456   ;;  %v41_v0 = vld [vmem:[#allocation2] sm:$0xff]  ;;  %v42_v1 = vld [vmem:[#allocation2 + $0x8] sm:$0xff]  ;;  %v312_v11 = vmov 0.0   ;;  %v66_v12 = vlaneseq }
  0x27   :  { %v45_v2 = vcombine.high %v41_v0, %v41_v0  ;;  %v50_v3 = vsel %vm49_vm0, %v41_v0, 0.0  ;;  %v46_v4 = vcombine.high %v42_v1, %v42_v1  ;;  %v55_v6 = vsel %vm49_vm0, %v42_v1, 0.0  ;;  %v63_v10 = vld [vmem:[#allocation5] sm:$0xf]  ;;  %220 = vmatprep.subr.mxu0 %v312_v11  ;;  %v216_v46 = vld [vmem:[%s384_s2] ss:$0 sm:$0xff] }
  0x28   :  { %vm313_vm1 = vmmov 0   ;;  %221 = vmatpush3.msk.msra.mxu0 %vm49_vm0, %v63_v10  ;;  %v67_v13 = vand.u32 127, %v66_v12  ;;  %v69_v14 = vshrl.u32 %v66_v12, 7  ;;  %vm76_vm2 = vcmask 1041409   ;;  %v217_v48 = vld [vmem:[%s384_s2 + $0x1] ss:$0 sm:$0xff] }
  0x29   :  { %v51_v5 = vsel %vm49_vm0, %v45_v2, 0.0  ;;  %v56_v7 = vsel %vm49_vm0, %v46_v4, 0.0  ;;  %222 = vmatprep.mubr.msk.f32.mxu0 %vm313_vm1, %v312_v11  ;;  %vm78_vm3 = vcmask 31744   ;;  %vm162_vm4 = vcmask 1041408   ;;  %s314_s13 = smov [#allocation7]  }
  0x2a   :  { %v52_v8 = vadd.f32 %v51_v5, %v50_v3  ;;  %v57_v9 = vadd.f32 %v56_v7, %v55_v6  ;;  %v70_v16 = vsub.s32 %v67_v13, %v69_v14  ;;  %s204_s14 = sshll.u32 %s314_s13, 4  ;;  %s205_s14 = int_to_ptr.vmem [resolvable:$true] %s204_s14 }
  0x2b   :  { %s280_s15 = scalar_lea.vmem %s205_s14, 32  ;;  %p285_p3 = scmp.lt.s32.totalorder %s205_s14, %s205_s14 }
  0x2c   :  { %53 = vadd.xlane.f32.xlu0 %v52_v8  ;;  %p281_p2 = scmp.ne.s32.totalorder %s205_s14, %s280_s15  ;;  %p286_p4 = scmp.lt.s32.totalorder %s280_s15, %s280_s15 }
  0x2e   :  { %p287_p5 = por %p286_p4, %p285_p3 }
  0x30   :  { %58 = vadd.xlane.f32.xlu0 %v57_v9  ;;  %p288_p6 = pnand %p287_p5, %p281_p2 }
  0xb9   :  { %v54_v15 = vpop.xlane.xlu0 %53 }
  0xba   :  { %v61_v17 = vmul.f32 0.00390625, %v54_v15 }
  0xbc   :  { %v71_v20 = vrot.slane %v61_v17, %v70_v16 }
  0xbd   :  { %v59_v18 = vpop.xlane.xlu0 %58 }
  0xbe   :  { %v62_v19 = vmul.f32 0.00390625, %v59_v18 }
  0xc0   :  { %v75_v21 = vrot.slane %v62_v19, %v70_v16 }
  0xc2   :  { %v77_v22 = vsel %vm76_vm2, %v75_v21, %v71_v20 }
  0xc3   :  { %223 = vmatmul.mubr.msk.f32.vlgmr.msra.gmra.mrb[0].mxu0 %vm78_vm3, %v77_v22 }
 0x196   :  { %v150_v23 = vpop.f32.mrb[0].mxu0 }
 0x197   :  { %156 = vst [vmem:[#allocation7] sm:$0x3] %v150_v23  ;;  %v224_v24 = vpop.f32.mrb[1].mxu0 }
 0x19e   :  { %v161_v25 = vld [vmem:[#allocation7] sm:$0x3] }
 0x19f   :  { %v163_v26 = vsel %vm162_vm4, %v161_v25, 0.0 }
 0x1a0   :  { %v164_v27 = vrot.slane %v163_v26, 4 }
 0x1a2   :  { %v165_v28 = vadd.f32 %v164_v27, %v163_v26 }
 0x1a4   :  { %v166_v29 = vrot.slane %v165_v28, 2 }
 0x1a6   :  { %v167_v30 = vadd.f32 %v166_v29, %v165_v28 }
 0x1a8   :  { %v168_v31 = vrot.slane %v167_v30, 1 }
 0x1aa   :  { %v169_v32 = vadd.f32 %v168_v31, %v167_v30 }
 0x1ac   :  { %v171_v33 = vmul.f32 0.5, %v169_v32 }
 0x1ae   :  { %v172_v34 = vsub.f32 %v161_v25, %v171_v33 }
 0x1b0   :  { %v173_v35 = vmul.f32 %v172_v34, %v172_v34 }
 0x1b2   :  { %v174_v36 = vsel %vm162_vm4, %v173_v35, 0.0 }
 0x1b3   :  { %v175_v37 = vrot.slane %v174_v36, 4 }
 0x1b5   :  { %v176_v38 = vadd.f32 %v175_v37, %v174_v36 }
 0x1b7   :  { %v177_v39 = vrot.slane %v176_v38, 2 }
 0x1b9   :  { %v178_v40 = vadd.f32 %v177_v39, %v176_v38 }
 0x1bb   :  { %v179_v41 = vrot.slane %v178_v40, 1 }
 0x1bd   :  { %v180_v42 = vadd.f32 %v179_v41, %v178_v40 }
 0x1bf   :  { %v181_v43 = vmul.f32 0.5, %v180_v42 }
 0x1c1   :  { %v184_v44 = vadd.f32 1e-05, %v181_v43 }
 0x1c3   :  { %234 = vrsqrt.f32 %v184_v44 }
 0x1cd   :  { %v235_v45 = vpop.eup %234 }
 0x1ce   :  { %v186_v47 = vmul.f32 %v235_v45, %v172_v34 }
 0x1d0   :  { %v191_v49 = vmul.f32 %v216_v46, %v186_v47 }
 0x1d2   :  { %v196_v50 = vadd.f32 %v217_v48, %v191_v49 }
 0x1d4   :  { %197 = vst [vmem:[#allocation7] sm:$0x3] %v196_v50 }
 0x1d5   :  { %291 = shalt.err (!%p288_p6)
}
 0x1d6   :  { %s292_s18 = scalar_lea.hbm %s385_s3, 32 }
 0x1d7   :  { %p293_p7 = scmp.ne.s32.totalorder %s385_s3, %s292_s18  ;;  %p296_p8 = scmp.lt.u32.totalorder %s292_s18, %s385_s3 }
 0x1d9   :  { %p298_p9 = pnand %p296_p8, %p293_p7 }
 0x1db   :  { %301 = shalt.err (!%p298_p9)
}
 0x1dc   :  { %207 = dma.vmem_to_hbm [thread:$0]  %s205_s14, 32, %s385_s3, [#allocation4]  }
 0x1dd   :  { %306 = dma.done.wait [#allocation4], 32  }
 0x1de   :  { %307 = vsyncadd [#allocation4], 4294967264 }
 0x1df   :  { %211 = vsyncpa [#allocation3], 1 }
 0x1e0   :  { %212 = vsyncpa [#allocation6], 1 }
 0x1e1   :  { %213 = vsyncpa [#allocation4], 1 }

</bundles_post_ra>
